<compile_context>
chip_gen: v7x
topology: tpu7x:2x2x1
jax: 0.10.0
libtpu: 0.0.40
codegen_flags: <defaults>
</compile_context>

<pallas_src>
import math

import jax
import jax.numpy as jnp
from jax import lax
from jax.experimental import pallas as pl
from jax.experimental.pallas import tpu as pltpu

LN_EPS = 1e-5
_INV_SQRT2 = 1.0 / math.sqrt(2.0)


def _round_up(n, m):
    return ((n + m - 1) // m) * m


def _gelu_exact(x):
    # PyTorch F.gelu default = exact erf-based gelu.
    return 0.5 * x * (1.0 + lax.erf(x * _INV_SQRT2))


def _layernorm(x, gamma, beta):
    # LayerNorm over the last (feature) axis, biased variance, eps=1e-5.
    mean = jnp.mean(x, axis=-1, keepdims=True)
    xc = x - mean
    var = jnp.mean(xc * xc, axis=-1, keepdims=True)
    inv = lax.rsqrt(var + LN_EPS)
    return xc * inv * gamma + beta


# Packed-vector row layout (all rows 256 lanes wide, f32):
#   0: b1 (256)    1: b1_1 (256)
#   2: L1.gamma    3: L1.beta
#   4: L2.gamma    5: L2.beta
#   6: b2_1 (128, padded)   7: b2_2 (128, padded)
#   8: b3   (128, padded)   9: b4   (1, padded)
#   10..15: zero padding (sublane multiple of 8)
_VEC_ROWS = 16
_VEC_COLS = 256


def critic_kernel(
    x_ref, a_ref,
    w1_ref, w11_ref, w21_ref, w22_ref, w3_ref, w4_ref,
    vec_ref,
    out_ref,
):
    f32 = jnp.float32
    bf16 = jnp.bfloat16

    vec = vec_ref[...]                       # (16, 256) f32, one resident slab
    b1, b11 = vec[0:1, :], vec[1:2, :]
    g1, be1 = vec[2:3, :], vec[3:4, :]
    g2, be2 = vec[4:5, :], vec[5:6, :]
    b21, b22 = vec[6:7, :128], vec[7:8, :128]
    b3, b4 = vec[8:9, :128], vec[9:10, 0:1]

    x = x_ref[...].astype(bf16)              # (TB, 13)
    a = a_ref[...].astype(bf16)              # (TB, 4)

    # State branch: fc1 -> LN1 -> gelu -> fc2_1 -> gelu
    h_x = jnp.dot(x, w1_ref[...], preferred_element_type=f32) + b1
    h_x = _gelu_exact(_layernorm(h_x, g1, be1))
    h_x = jnp.dot(h_x.astype(bf16), w21_ref[...], preferred_element_type=f32) + b21
    h_x = _gelu_exact(h_x)                   # (TB, 128)

    # Action branch: fc1_1 -> LN2 -> gelu -> fc2_2 -> gelu
    h_a = jnp.dot(a, w11_ref[...], preferred_element_type=f32) + b11
    h_a = _gelu_exact(_layernorm(h_a, g2, be2))
    h_a = jnp.dot(h_a.astype(bf16), w22_ref[...], preferred_element_type=f32) + b22
    h_a = _gelu_exact(h_a)                   # (TB, 128)

    # fc3 on cat([h_x, h_a]) == h_x @ w3[:128] + h_a @ w3[128:]  (no concat)
    h = (jnp.dot(h_x.astype(bf16), w3_ref[0:128, :], preferred_element_type=f32)
         + jnp.dot(h_a.astype(bf16), w3_ref[128:256, :], preferred_element_type=f32)
         + b3)
    h = _gelu_exact(h)                       # (TB, 128)

    # fc4 -> value
    v = jnp.dot(h.astype(bf16), w4_ref[...], preferred_element_type=f32) + b4

    out_ref[...] = v.astype(out_ref.dtype)


def _pick_batch_tile(batch, block_b):
    """Batch tile: multiple of 8 sublanes, <= block_b, minimal padding waste."""
    n_blocks = max(1, -(-batch // block_b))          # ceil div
    tb = _round_up(-(-batch // n_blocks), 8)         # even split, 8-aligned
    tb = max(8, min(tb, _round_up(block_b, 8)))
    return tb, tb * n_blocks, n_blocks


def critic_forward(x1, a1, kernel_args, *, block_b=512):
    """x1: (B, 13) f32, a1: (B, 4) f32 -> (B, 1) f32."""
    w1, w11, w21, w22, w3, w4, vec = kernel_args
    B = x1.shape[0]

    TB, B_pad, n_blocks = _pick_batch_tile(B, block_b)
    if B_pad != B:
        x1 = jnp.pad(x1, ((0, B_pad - B), (0, 0)))
        a1 = jnp.pad(a1, ((0, B_pad - B), (0, 0)))
    grid = (n_blocks,)

    # Advisory cost estimate for XLA's scheduler.
    flops = 2 * B_pad * (13 * 256 + 4 * 256 + 3 * 256 * 128 + 128 * 1)
    transcendentals = B_pad * (256 + 256 + 128 + 128 + 128)   # 5 erf-gelu layers
    weight_bytes = 2 * (13 * 256 + 4 * 256 + 3 * 256 * 128 + 128)  # bf16
    bytes_accessed = (weight_bytes + _VEC_ROWS * _VEC_COLS * 4
                      + B_pad * (13 + 4) * 4 + B_pad * 4)
    ce = pl.CostEstimate(flops=int(flops),
                         transcendentals=int(transcendentals),
                         bytes_accessed=int(bytes_accessed))

    out = pl.pallas_call(
        critic_kernel,
        out_shape=jax.ShapeDtypeStruct((B_pad, 1), jnp.float32),
        grid_spec=pltpu.PrefetchScalarGridSpec(
            num_scalar_prefetch=0,
            grid=grid,
            in_specs=[
                pl.BlockSpec((TB, 13), lambda i: (i, 0)),        # x1 tile
                pl.BlockSpec((TB, 4), lambda i: (i, 0)),         # a1 tile
                pl.BlockSpec((13, 256), lambda i: (0, 0)),       # w1   (resident)
                pl.BlockSpec((4, 256), lambda i: (0, 0)),        # w1_1
                pl.BlockSpec((256, 128), lambda i: (0, 0)),      # w2_1
                pl.BlockSpec((256, 128), lambda i: (0, 0)),      # w2_2
                pl.BlockSpec((256, 128), lambda i: (0, 0)),      # w3
                pl.BlockSpec((128, 1), lambda i: (0, 0)),        # w4
                pl.BlockSpec((_VEC_ROWS, _VEC_COLS), lambda i: (0, 0)),  # packed vectors
            ],
            out_specs=pl.BlockSpec((TB, 1), lambda i: (i, 0)),
        ),
        compiler_params=pltpu.CompilerParams(
            dimension_semantics=("parallel",)),
        cost_estimate=ce,
    )(x1, a1, w1, w11, w21, w22, w3, w4, vec)

    return out[:B]


def init_params(key):
    """Deterministic synthetic init matching the PyTorch Critic.

    fc weights: kaiming_normal_ (fan_in, gain=sqrt(2)) -> std = sqrt(2/fan_in)
    fc biases : PyTorch Linear default uniform(-1/sqrt(fan_in), 1/sqrt(fan_in))
    LayerNorm : gamma=1, beta=0
    Returns (kernel_args, ref_params):
      kernel_args: bf16 weights (in, out) + packed (16, 256) f32 vector slab.
      ref_params : plain dict for the JAX reference.
    """
    layers = [("fc1", 13, 256), ("fc1_1", 4, 256),
              ("fc2_1", 256, 128), ("fc2_2", 256, 128),
              ("fc3", 256, 128), ("fc4", 128, 1)]
    keys = jax.random.split(key, 2 * len(layers))

    w = {}
    b = {}
    for i, (name, fin, fout) in enumerate(layers):
        wk, bk = keys[2 * i], keys[2 * i + 1]
        std = math.sqrt(2.0 / fin)
        w[name] = (std * jax.random.normal(wk, (fin, fout), jnp.float32)
                   ).astype(jnp.bfloat16)
        bound = 1.0 / math.sqrt(fin)
        b[name] = jax.random.uniform(bk, (1, fout), jnp.float32, -bound, bound)

    g1 = jnp.ones((1, 256), jnp.float32)
    be1 = jnp.zeros((1, 256), jnp.float32)
    g2 = jnp.ones((1, 256), jnp.float32)
    be2 = jnp.zeros((1, 256), jnp.float32)

    def _row(v):  # pad a (1, n) vector to a 256-lane row
        return jnp.pad(v, ((0, 0), (0, _VEC_COLS - v.shape[1])))

    vec = jnp.concatenate(
        [_row(b["fc1"]), _row(b["fc1_1"]),
         _row(g1), _row(be1), _row(g2), _row(be2),
         _row(b["fc2_1"]), _row(b["fc2_2"]), _row(b["fc3"]), _row(b["fc4"]),
         jnp.zeros((_VEC_ROWS - 10, _VEC_COLS), jnp.float32)],
        axis=0)

    kernel_args = (w["fc1"], w["fc1_1"], w["fc2_1"], w["fc2_2"],
                   w["fc3"], w["fc4"], vec)
    ref_params = dict(w1=w["fc1"], w1_1=w["fc1_1"], w2_1=w["fc2_1"],
                      w2_2=w["fc2_2"], w3=w["fc3"], w4=w["fc4"],
                      b1=b["fc1"], b1_1=b["fc1_1"], b2_1=b["fc2_1"],
                      b2_2=b["fc2_2"], b3=b["fc3"], b4=b["fc4"],
                      g1=g1, be1=be1, g2=g2, be2=be2)
    return kernel_args, ref_params


def _mm(x, wgt):
    # Mirrors the kernel: bf16 MXU operands, f32 accumulation.
    return jnp.dot(x.astype(jnp.bfloat16), wgt.astype(jnp.bfloat16),
                   preferred_element_type=jnp.float32)


def critic_reference(x1, a1, p):
    """Plain-JAX reference (same bf16 matmul inputs as the kernel)."""
    h_x = _mm(x1, p["w1"]) + p["b1"]
    h_x = _gelu_exact(_layernorm(h_x, p["g1"], p["be1"]))
    h_x = _gelu_exact(_mm(h_x, p["w2_1"]) + p["b2_1"])

    h_a = _mm(a1, p["w1_1"]) + p["b1_1"]
    h_a = _gelu_exact(_layernorm(h_a, p["g2"], p["be2"]))
    h_a = _gelu_exact(_mm(h_a, p["w2_2"]) + p["b2_2"])

    h = jnp.concatenate([h_x, h_a], axis=1)
    h = _gelu_exact(_mm(h, p["w3"]) + p["b3"])
    return _mm(h, p["w4"]) + p["b4"]


if __name__ == "__main__":
    key = jax.random.PRNGKey(0)
    pkey, xkey, akey = jax.random.split(key, 3)

    kernel_args, ref_params = init_params(pkey)

    # Small batch, state dim 13, action dim 4 as in the module.
    B = 8
    x1 = jax.random.normal(xkey, (B, 13), dtype=jnp.float32)
    a1 = jax.random.normal(akey, (B, 4), dtype=jnp.float32)

    out = jax.block_until_ready(critic_forward(x1, a1, kernel_args))
    ref = jax.block_until_ready(critic_reference(x1, a1, ref_params))
    assert out.shape == (B, 1), out.shape
    max_err = float(jnp.max(jnp.abs(out - ref)))
    assert max_err < 1e-4, f"max abs err {max_err}"

    # Second check: exercise grid > 1, batch padding and adaptive tiling.
    B2 = 200
    x2 = jax.random.normal(jax.random.PRNGKey(1), (B2, 13), dtype=jnp.float32)
    a2 = jax.random.normal(jax.random.PRNGKey(2), (B2, 4), dtype=jnp.float32)
    out2 = jax.block_until_ready(critic_forward(x2, a2, kernel_args, block_b=64))
    ref2 = jax.block_until_ready(critic_reference(x2, a2, ref_params))
    assert out2.shape == (B2, 1), out2.shape
    max_err2 = float(jnp.max(jnp.abs(out2 - ref2)))
    assert max_err2 < 1e-4, f"max abs err (tiled) {max_err2}"

    print("KERNEL_OK")
</pallas_src>

<mosaic_0001>
module attributes {stable_mosaic.version = 11 : i64} {
  func.func @critic_kernel(%arg0: i32, %arg1: memref<8x13xf32, #tpu.memory_space<vmem>>, %arg2: memref<8x4xf32, #tpu.memory_space<vmem>>, %arg3: memref<13x256xbf16, #tpu.memory_space<vmem>>, %arg4: memref<4x256xbf16, #tpu.memory_space<vmem>>, %arg5: memref<256x128xbf16, #tpu.memory_space<vmem>>, %arg6: memref<256x128xbf16, #tpu.memory_space<vmem>>, %arg7: memref<256x128xbf16, #tpu.memory_space<vmem>>, %arg8: memref<128x1xbf16, #tpu.memory_space<vmem>>, %arg9: memref<16x256xf32, #tpu.memory_space<vmem>>, %arg10: memref<8x1xf32, #tpu.memory_space<vmem>>) attributes {dimension_semantics = [#tpu.dimension_semantics<parallel>], iteration_bounds = array<i64: 1>, scalar_prefetch = 0 : i64, scratch_operands = 0 : i64, tpu.core_type = #tpu.core_type<tc>, window_params = [{transform_indices = @transform_0, window_bounds = array<i64: 8, 13>}, {transform_indices = @transform_1, window_bounds = array<i64: 8, 4>}, {pipeline_mode = #tpu.pipeline_mode<synchronous>, transform_indices = @transform_2, window_bounds = array<i64: 13, 256>}, {pipeline_mode = #tpu.pipeline_mode<synchronous>, transform_indices = @transform_3, window_bounds = array<i64: 4, 256>}, {pipeline_mode = #tpu.pipeline_mode<synchronous>, transform_indices = @transform_4, window_bounds = array<i64: 256, 128>}, {pipeline_mode = #tpu.pipeline_mode<synchronous>, transform_indices = @transform_5, window_bounds = array<i64: 256, 128>}, {pipeline_mode = #tpu.pipeline_mode<synchronous>, transform_indices = @transform_6, window_bounds = array<i64: 256, 128>}, {pipeline_mode = #tpu.pipeline_mode<synchronous>, transform_indices = @transform_7, window_bounds = array<i64: 128, 1>}, {pipeline_mode = #tpu.pipeline_mode<synchronous>, transform_indices = @transform_8, window_bounds = array<i64: 16, 256>}, {transform_indices = @transform_9, window_bounds = array<i64: 8, 1>}]} {
    %c0 = arith.constant 0 : index
    %c0_0 = arith.constant 0 : index
    %0 = vector.load %arg9[%c0, %c0_0] : memref<16x256xf32, #tpu.memory_space<vmem>>, vector<16x256xf32>
    %1 = vector.extract_strided_slice %0 {offsets = [0, 0], sizes = [1, 256], strides = [1, 1]} : vector<16x256xf32> to vector<1x256xf32>
    %2 = vector.extract_strided_slice %0 {offsets = [1, 0], sizes = [1, 256], strides = [1, 1]} : vector<16x256xf32> to vector<1x256xf32>
    %3 = vector.extract_strided_slice %0 {offsets = [2, 0], sizes = [1, 256], strides = [1, 1]} : vector<16x256xf32> to vector<1x256xf32>
    %4 = vector.extract_strided_slice %0 {offsets = [3, 0], sizes = [1, 256], strides = [1, 1]} : vector<16x256xf32> to vector<1x256xf32>
    %5 = vector.extract_strided_slice %0 {offsets = [4, 0], sizes = [1, 256], strides = [1, 1]} : vector<16x256xf32> to vector<1x256xf32>
    %6 = vector.extract_strided_slice %0 {offsets = [5, 0], sizes = [1, 256], strides = [1, 1]} : vector<16x256xf32> to vector<1x256xf32>
    %7 = vector.extract_strided_slice %0 {offsets = [6, 0], sizes = [1, 128], strides = [1, 1]} : vector<16x256xf32> to vector<1x128xf32>
    %8 = vector.extract_strided_slice %0 {offsets = [7, 0], sizes = [1, 128], strides = [1, 1]} : vector<16x256xf32> to vector<1x128xf32>
    %9 = vector.extract_strided_slice %0 {offsets = [8, 0], sizes = [1, 128], strides = [1, 1]} : vector<16x256xf32> to vector<1x128xf32>
    %10 = vector.extract_strided_slice %0 {offsets = [9, 0], sizes = [1, 1], strides = [1, 1]} : vector<16x256xf32> to vector<1x1xf32>
    %c0_1 = arith.constant 0 : index
    %c0_2 = arith.constant 0 : index
    %11 = vector.load %arg1[%c0_1, %c0_2] : memref<8x13xf32, #tpu.memory_space<vmem>>, vector<8x13xf32>
    %12 = arith.truncf %11 : vector<8x13xf32> to vector<8x13xbf16>
    %c0_3 = arith.constant 0 : index
    %c0_4 = arith.constant 0 : index
    %13 = vector.load %arg2[%c0_3, %c0_4] : memref<8x4xf32, #tpu.memory_space<vmem>>, vector<8x4xf32>
    %14 = arith.truncf %13 : vector<8x4xf32> to vector<8x4xbf16>
    %c0_5 = arith.constant 0 : index
    %c0_6 = arith.constant 0 : index
    %15 = vector.load %arg3[%c0_5, %c0_6] : memref<13x256xbf16, #tpu.memory_space<vmem>>, vector<13x256xbf16>
    %cst = arith.constant dense<0.000000e+00> : vector<8x256xf32>
    %16 = tpu.matmul %12, %15, %cst {dimension_numbers = #tpu.dot_dimension_numbers<[1], [0], [0], [1], [0, 0, 1, 1], [], []>} : vector<8x13xbf16>, vector<13x256xbf16>, vector<8x256xf32> -> vector<8x256xf32>
    %17 = vector.broadcast %1 : vector<1x256xf32> to vector<8x256xf32>
    %18 = arith.addf %16, %17 : vector<8x256xf32>
    %cst_7 = arith.constant dense<0.000000e+00> : vector<8xf32>
    %19 = vector.multi_reduction <add>, %18, %cst_7 [1] : vector<8x256xf32> to vector<8xf32>
    %20 = vector.shape_cast %19 : vector<8xf32> to vector<8x1xf32>
    %cst_8 = arith.constant 2.560000e+02 : f32
    %21 = vector.broadcast %cst_8 : f32 to vector<8x1xf32>
    %22 = arith.divf %20, %21 : vector<8x1xf32>
    %23 = vector.broadcast %22 : vector<8x1xf32> to vector<8x256xf32>
    %24 = arith.subf %18, %23 : vector<8x256xf32>
    %25 = arith.mulf %24, %24 : vector<8x256xf32>
    %cst_9 = arith.constant dense<0.000000e+00> : vector<8xf32>
    %26 = vector.multi_reduction <add>, %25, %cst_9 [1] : vector<8x256xf32> to vector<8xf32>
    %27 = vector.shape_cast %26 : vector<8xf32> to vector<8x1xf32>
    %cst_10 = arith.constant 2.560000e+02 : f32
    %28 = vector.broadcast %cst_10 : f32 to vector<8x1xf32>
    %29 = arith.divf %27, %28 : vector<8x1xf32>
    %cst_11 = arith.constant 9.99999974E-6 : f32
    %30 = vector.broadcast %cst_11 : f32 to vector<8x1xf32>
    %31 = arith.addf %29, %30 : vector<8x1xf32>
    %32 = math.rsqrt %31 : vector<8x1xf32>
    %33 = vector.broadcast %32 : vector<8x1xf32> to vector<8x256xf32>
    %34 = arith.mulf %24, %33 : vector<8x256xf32>
    %35 = vector.broadcast %3 : vector<1x256xf32> to vector<8x256xf32>
    %36 = arith.mulf %34, %35 : vector<8x256xf32>
    %37 = vector.broadcast %4 : vector<1x256xf32> to vector<8x256xf32>
    %38 = arith.addf %36, %37 : vector<8x256xf32>
    %cst_12 = arith.constant 5.000000e-01 : f32
    %39 = vector.broadcast %cst_12 : f32 to vector<8x256xf32>
    %40 = arith.mulf %39, %38 : vector<8x256xf32>
    %cst_13 = arith.constant 0.707106769 : f32
    %41 = vector.broadcast %cst_13 : f32 to vector<8x256xf32>
    %42 = arith.mulf %38, %41 : vector<8x256xf32>
    %43 = math.erf %42 : vector<8x256xf32>
    %cst_14 = arith.constant 1.000000e+00 : f32
    %44 = vector.broadcast %cst_14 : f32 to vector<8x256xf32>
    %45 = arith.addf %44, %43 : vector<8x256xf32>
    %46 = arith.mulf %40, %45 : vector<8x256xf32>
    %47 = arith.truncf %46 : vector<8x256xf32> to vector<8x256xbf16>
    %c0_15 = arith.constant 0 : index
    %c0_16 = arith.constant 0 : index
    %48 = vector.load %arg5[%c0_15, %c0_16] : memref<256x128xbf16, #tpu.memory_space<vmem>>, vector<256x128xbf16>
    %cst_17 = arith.constant dense<0.000000e+00> : vector<8x128xf32>
    %49 = tpu.matmul %47, %48, %cst_17 {dimension_numbers = #tpu.dot_dimension_numbers<[1], [0], [0], [1], [0, 0, 1, 1], [], []>} : vector<8x256xbf16>, vector<256x128xbf16>, vector<8x128xf32> -> vector<8x128xf32>
    %50 = vector.broadcast %7 : vector<1x128xf32> to vector<8x128xf32>
    %51 = arith.addf %49, %50 : vector<8x128xf32>
    %cst_18 = arith.constant 5.000000e-01 : f32
    %52 = vector.broadcast %cst_18 : f32 to vector<8x128xf32>
    %53 = arith.mulf %52, %51 : vector<8x128xf32>
    %cst_19 = arith.constant 0.707106769 : f32
    %54 = vector.broadcast %cst_19 : f32 to vector<8x128xf32>
    %55 = arith.mulf %51, %54 : vector<8x128xf32>
    %56 = math.erf %55 : vector<8x128xf32>
    %cst_20 = arith.constant 1.000000e+00 : f32
    %57 = vector.broadcast %cst_20 : f32 to vector<8x128xf32>
    %58 = arith.addf %57, %56 : vector<8x128xf32>
    %59 = arith.mulf %53, %58 : vector<8x128xf32>
    %c0_21 = arith.constant 0 : index
    %c0_22 = arith.constant 0 : index
    %60 = vector.load %arg4[%c0_21, %c0_22] : memref<4x256xbf16, #tpu.memory_space<vmem>>, vector<4x256xbf16>
    %cst_23 = arith.constant dense<0.000000e+00> : vector<8x256xf32>
    %61 = tpu.matmul %14, %60, %cst_23 {dimension_numbers = #tpu.dot_dimension_numbers<[1], [0], [0], [1], [0, 0, 1, 1], [], []>} : vector<8x4xbf16>, vector<4x256xbf16>, vector<8x256xf32> -> vector<8x256xf32>
    %62 = vector.broadcast %2 : vector<1x256xf32> to vector<8x256xf32>
    %63 = arith.addf %61, %62 : vector<8x256xf32>
    %cst_24 = arith.constant dense<0.000000e+00> : vector<8xf32>
    %64 = vector.multi_reduction <add>, %63, %cst_24 [1] : vector<8x256xf32> to vector<8xf32>
    %65 = vector.shape_cast %64 : vector<8xf32> to vector<8x1xf32>
    %cst_25 = arith.constant 2.560000e+02 : f32
    %66 = vector.broadcast %cst_25 : f32 to vector<8x1xf32>
    %67 = arith.divf %65, %66 : vector<8x1xf32>
    %68 = vector.broadcast %67 : vector<8x1xf32> to vector<8x256xf32>
    %69 = arith.subf %63, %68 : vector<8x256xf32>
    %70 = arith.mulf %69, %69 : vector<8x256xf32>
    %cst_26 = arith.constant dense<0.000000e+00> : vector<8xf32>
    %71 = vector.multi_reduction <add>, %70, %cst_26 [1] : vector<8x256xf32> to vector<8xf32>
    %72 = vector.shape_cast %71 : vector<8xf32> to vector<8x1xf32>
    %cst_27 = arith.constant 2.560000e+02 : f32
    %73 = vector.broadcast %cst_27 : f32 to vector<8x1xf32>
    %74 = arith.divf %72, %73 : vector<8x1xf32>
    %cst_28 = arith.constant 9.99999974E-6 : f32
    %75 = vector.broadcast %cst_28 : f32 to vector<8x1xf32>
    %76 = arith.addf %74, %75 : vector<8x1xf32>
    %77 = math.rsqrt %76 : vector<8x1xf32>
    %78 = vector.broadcast %77 : vector<8x1xf32> to vector<8x256xf32>
    %79 = arith.mulf %69, %78 : vector<8x256xf32>
    %80 = vector.broadcast %5 : vector<1x256xf32> to vector<8x256xf32>
    %81 = arith.mulf %79, %80 : vector<8x256xf32>
    %82 = vector.broadcast %6 : vector<1x256xf32> to vector<8x256xf32>
    %83 = arith.addf %81, %82 : vector<8x256xf32>
    %cst_29 = arith.constant 5.000000e-01 : f32
    %84 = vector.broadcast %cst_29 : f32 to vector<8x256xf32>
    %85 = arith.mulf %84, %83 : vector<8x256xf32>
    %cst_30 = arith.constant 0.707106769 : f32
    %86 = vector.broadcast %cst_30 : f32 to vector<8x256xf32>
    %87 = arith.mulf %83, %86 : vector<8x256xf32>
    %88 = math.erf %87 : vector<8x256xf32>
    %cst_31 = arith.constant 1.000000e+00 : f32
    %89 = vector.broadcast %cst_31 : f32 to vector<8x256xf32>
    %90 = arith.addf %89, %88 : vector<8x256xf32>
    %91 = arith.mulf %85, %90 : vector<8x256xf32>
    %92 = arith.truncf %91 : vector<8x256xf32> to vector<8x256xbf16>
    %c0_32 = arith.constant 0 : index
    %c0_33 = arith.constant 0 : index
    %93 = vector.load %arg6[%c0_32, %c0_33] : memref<256x128xbf16, #tpu.memory_space<vmem>>, vector<256x128xbf16>
    %cst_34 = arith.constant dense<0.000000e+00> : vector<8x128xf32>
    %94 = tpu.matmul %92, %93, %cst_34 {dimension_numbers = #tpu.dot_dimension_numbers<[1], [0], [0], [1], [0, 0, 1, 1], [], []>} : vector<8x256xbf16>, vector<256x128xbf16>, vector<8x128xf32> -> vector<8x128xf32>
    %95 = vector.broadcast %8 : vector<1x128xf32> to vector<8x128xf32>
    %96 = arith.addf %94, %95 : vector<8x128xf32>
    %cst_35 = arith.constant 5.000000e-01 : f32
    %97 = vector.broadcast %cst_35 : f32 to vector<8x128xf32>
    %98 = arith.mulf %97, %96 : vector<8x128xf32>
    %cst_36 = arith.constant 0.707106769 : f32
    %99 = vector.broadcast %cst_36 : f32 to vector<8x128xf32>
    %100 = arith.mulf %96, %99 : vector<8x128xf32>
    %101 = math.erf %100 : vector<8x128xf32>
    %cst_37 = arith.constant 1.000000e+00 : f32
    %102 = vector.broadcast %cst_37 : f32 to vector<8x128xf32>
    %103 = arith.addf %102, %101 : vector<8x128xf32>
    %104 = arith.mulf %98, %103 : vector<8x128xf32>
    %105 = arith.truncf %59 : vector<8x128xf32> to vector<8x128xbf16>
    %c0_38 = arith.constant 0 : index
    %c0_39 = arith.constant 0 : index
    %106 = vector.load %arg7[%c0_38, %c0_39] : memref<256x128xbf16, #tpu.memory_space<vmem>>, vector<128x128xbf16>
    %cst_40 = arith.constant dense<0.000000e+00> : vector<8x128xf32>
    %107 = tpu.matmul %105, %106, %cst_40 {dimension_numbers = #tpu.dot_dimension_numbers<[1], [0], [0], [1], [0, 0, 1, 1], [], []>} : vector<8x128xbf16>, vector<128x128xbf16>, vector<8x128xf32> -> vector<8x128xf32>
    %108 = arith.truncf %104 : vector<8x128xf32> to vector<8x128xbf16>
    %c128 = arith.constant 128 : index
    %c0_41 = arith.constant 0 : index
    %109 = vector.load %arg7[%c128, %c0_41] : memref<256x128xbf16, #tpu.memory_space<vmem>>, vector<128x128xbf16>
    %cst_42 = arith.constant dense<0.000000e+00> : vector<8x128xf32>
    %110 = tpu.matmul %108, %109, %cst_42 {dimension_numbers = #tpu.dot_dimension_numbers<[1], [0], [0], [1], [0, 0, 1, 1], [], []>} : vector<8x128xbf16>, vector<128x128xbf16>, vector<8x128xf32> -> vector<8x128xf32>
    %111 = arith.addf %107, %110 : vector<8x128xf32>
    %112 = vector.broadcast %9 : vector<1x128xf32> to vector<8x128xf32>
    %113 = arith.addf %111, %112 : vector<8x128xf32>
    %cst_43 = arith.constant 5.000000e-01 : f32
    %114 = vector.broadcast %cst_43 : f32 to vector<8x128xf32>
    %115 = arith.mulf %114, %113 : vector<8x128xf32>
    %cst_44 = arith.constant 0.707106769 : f32
    %116 = vector.broadcast %cst_44 : f32 to vector<8x128xf32>
    %117 = arith.mulf %113, %116 : vector<8x128xf32>
    %118 = math.erf %117 : vector<8x128xf32>
    %cst_45 = arith.constant 1.000000e+00 : f32
    %119 = vector.broadcast %cst_45 : f32 to vector<8x128xf32>
    %120 = arith.addf %119, %118 : vector<8x128xf32>
    %121 = arith.mulf %115, %120 : vector<8x128xf32>
    %122 = arith.truncf %121 : vector<8x128xf32> to vector<8x128xbf16>
    %c0_46 = arith.constant 0 : index
    %c0_47 = arith.constant 0 : index
    %123 = vector.load %arg8[%c0_46, %c0_47] : memref<128x1xbf16, #tpu.memory_space<vmem>>, vector<128x1xbf16>
    %cst_48 = arith.constant dense<0.000000e+00> : vector<8x1xf32>
    %124 = tpu.matmul %122, %123, %cst_48 {dimension_numbers = #tpu.dot_dimension_numbers<[1], [0], [0], [1], [0, 0, 1, 1], [], []>} : vector<8x128xbf16>, vector<128x1xbf16>, vector<8x1xf32> -> vector<8x1xf32>
    %125 = vector.broadcast %10 : vector<1x1xf32> to vector<8x1xf32>
    %126 = arith.addf %124, %125 : vector<8x1xf32>
    %c0_49 = arith.constant 0 : index
    %c0_50 = arith.constant 0 : index
    %127 = vector.load %arg10[%c0_49, %c0_50] : memref<8x1xf32, #tpu.memory_space<vmem>>, vector<8x1xf32>
    tpu.vector_store %arg10[%c0_49, %c0_50], %126 {strides = array<i32>} : memref<8x1xf32, #tpu.memory_space<vmem>>, vector<8x1xf32>,
    return
  }
  func.func @transform_0(%arg0: i32) -> (i32, i32) {
    %c0_i32 = arith.constant 0 : i32
    %c0_i32_0 = arith.constant 0 : i32
    return %arg0, %c0_i32 : i32, i32
  }
  func.func @transform_1(%arg0: i32) -> (i32, i32) {
    %c0_i32 = arith.constant 0 : i32
    %c0_i32_0 = arith.constant 0 : i32
    return %arg0, %c0_i32 : i32, i32
  }
  func.func @transform_2(%arg0: i32) -> (i32, i32) {
    %c0_i32 = arith.constant 0 : i32
    %c0_i32_0 = arith.constant 0 : i32
    %c0_i32_1 = arith.constant 0 : i32
    return %c0_i32, %c0_i32_0 : i32, i32
  }
  func.func @transform_3(%arg0: i32) -> (i32, i32) {
    %c0_i32 = arith.constant 0 : i32
    %c0_i32_0 = arith.constant 0 : i32
    %c0_i32_1 = arith.constant 0 : i32
    return %c0_i32, %c0_i32_0 : i32, i32
  }
  func.func @transform_4(%arg0: i32) -> (i32, i32) {
    %c0_i32 = arith.constant 0 : i32
    %c0_i32_0 = arith.constant 0 : i32
    %c0_i32_1 = arith.constant 0 : i32
    return %c0_i32, %c0_i32_0 : i32, i32
  }
  func.func @transform_5(%arg0: i32) -> (i32, i32) {
    %c0_i32 = arith.constant 0 : i32
    %c0_i32_0 = arith.constant 0 : i32
    %c0_i32_1 = arith.constant 0 : i32
    return %c0_i32, %c0_i32_0 : i32, i32
  }
  func.func @transform_6(%arg0: i32) -> (i32, i32) {
    %c0_i32 = arith.constant 0 : i32
    %c0_i32_0 = arith.constant 0 : i32
    %c0_i32_1 = arith.constant 0 : i32
    return %c0_i32, %c0_i32_0 : i32, i32
  }
  func.func @transform_7(%arg0: i32) -> (i32, i32) {
    %c0_i32 = arith.constant 0 : i32
    %c0_i32_0 = arith.constant 0 : i32
    %c0_i32_1 = arith.constant 0 : i32
    return %c0_i32, %c0_i32_0 : i32, i32
  }
  func.func @transform_8(%arg0: i32) -> (i32, i32) {
    %c0_i32 = arith.constant 0 : i32
    %c0_i32_0 = arith.constant 0 : i32
    %c0_i32_1 = arith.constant 0 : i32
    return %c0_i32, %c0_i32_0 : i32, i32
  }
  func.func @transform_9(%arg0: i32) -> (i32, i32) {
    %c0_i32 = arith.constant 0 : i32
    %c0_i32_0 = arith.constant 0 : i32
    return %arg0, %c0_i32 : i32, i32
  }
}

</mosaic_0001>

<bundles_post_ra>
// kernel: tpu_custom_call.1
= control target key start
LH: loop header
LB: loop body
LE: loop exit
PB: predicated region body
PF: predicated region fallthrough
CT: control target
= control target key end

     0   :  { %14 = vsyncpa [#allocation3], 0  ;;  %s1611_s0 = inlined_call_operand.vmem [shape: f32[8,13], index: 0, kind: input, shape index: {}]   ;;  %s1612_s1 = inlined_call_operand.vmem [shape: f32[8,4], index: 1, kind: input, shape index: {}]   ;;  %s1613_s2 = inlined_call_operand.vmem [shape: bf16[13,256], index: 2, kind: input, shape index: {}]   ;;  %s1614_s3 = inlined_call_operand.vmem [shape: bf16[4,256], index: 3, kind: input, shape index: {}]   ;;  %s1615_s4 = inlined_call_operand.hbm [shape: bf16[256,128], index: 4, kind: input, shape index: {}]   ;;  %s1616_s5 = inlined_call_operand.hbm [shape: bf16[256,128], index: 5, kind: input, shape index: {}]   ;;  %s1617_s6 = inlined_call_operand.hbm [shape: bf16[256,128], index: 6, kind: input, shape index: {}]   ;;  %s1618_s7 = inlined_call_operand.vmem [shape: bf16[128,1], index: 7, kind: input, shape index: {}]   ;;  %s1619_s8 = inlined_call_operand.vmem [shape: f32[16,256], index: 8, kind: input, shape index: {}]   ;;  %s1620_s9 = inlined_call_operand.vmem [shape: f32[8,1], index: 9, kind: output, shape index: {}]  }
   0x1   :  { %15 = vsyncpa [#allocation5], 0  ;;  %s1361_s30 = smov [#allocation4]   ;;  %s1362_s11 = smov [#allocation2]  }
   0x2   :  { %s41_s10 = sshll.u32 %s1361_s30, 4  ;;  %s29_s12 = sshll.u32 %s1362_s11, 4  ;;  %s42_s10 = int_to_ptr.vmem [resolvable:$true] %s41_s10  ;;  %s1420_s12 = int_to_ptr.vmem [resolvable:$true] %s29_s12 }
   0x3   :  { %s1291_s15 = scalar_lea.hbm %s1616_s5, 2048 }
   0x4   :  { %p1292_p0 = scmp.ne.s32.totalorder %s1616_s5, %s1291_s15  ;;  %p1295_p1 = scmp.lt.u32.totalorder %s1291_s15, %s1616_s5 }
   0x6   :  { %p1297_p2 = pnand %p1295_p1, %p1292_p0 }
   0x8   :  { %1300 = shalt.err (!%p1297_p2)
}
   0x9   :  { %s1301_s20 = scalar_lea.vmem %s42_s10, 2048  ;;  %p1306_p4 = scmp.lt.s32.totalorder %s42_s10, %s42_s10 }
   0xa   :  { %p1302_p3 = scmp.ne.s32.totalorder %s42_s10, %s1301_s20  ;;  %p1307_p5 = scmp.lt.s32.totalorder %s1301_s20, %s1301_s20 }
   0xc   :  { %p1308_p6 = por %p1307_p5, %p1306_p4 }
   0xe   :  { %p1309_p7 = pnand %p1308_p6, %p1302_p3 }
  0x10   :  { %1312 = shalt.err (!%p1309_p7)
}
  0x11   :  { %s1363_s21 = smov 64   ;;  %s1364_s22 = smov 4  }
  0x12   :  { %47 = dma.hbm_to_vmem [thread:$0]  %s1616_s5, 2048, %s42_s10, [#allocation5], %s1363_s21, %s1363_s21, %s1364_s22  }
  0x13   :  { %s1313_s27 = scalar_lea.hbm %s1615_s4, 2048 }
  0x14   :  { %p1314_p8 = scmp.ne.s32.totalorder %s1615_s4, %s1313_s27  ;;  %p1317_p9 = scmp.lt.u32.totalorder %s1313_s27, %s1615_s4 }
  0x16   :  { %p1319_p10 = pnand %p1317_p9, %p1314_p8 }
  0x18   :  { %1322 = shalt.err (!%p1319_p10)
}
  0x19   :  { %s1323_s13 = scalar_lea.vmem %s1420_s12, 2048  ;;  %p1328_p12 = scmp.lt.s32.totalorder %s1420_s12, %s1420_s12 }
  0x1a   :  { %p1324_p11 = scmp.ne.s32.totalorder %s1420_s12, %s1323_s13  ;;  %p1329_p13 = scmp.lt.s32.totalorder %s1323_s13, %s1323_s13 }
  0x1c   :  { %p1330_p0 = por %p1329_p13, %p1328_p12 }
  0x1e   :  { %p1331_p1 = pnand %p1330_p0, %p1324_p11 }
  0x20   :  { %1334 = shalt.err (!%p1331_p1)
}
  0x21   :  { %35 = dma.hbm_to_vmem [thread:$0]  %s1615_s4, 2048, %s1420_s12, [#allocation3], %s1363_s21, %s1363_s21, %s1364_s22  }
  0x22   :  { %s1365_s14 = smov [#allocation6]   ;;  %s1335_s18 = scalar_lea.hbm %s1617_s6, 2048 }
  0x23   :  { %s53_s15 = sshll.u32 %s1365_s14, 4  ;;  %p1336_p2 = scmp.ne.s32.totalorder %s1617_s6, %s1335_s18  ;;  %s54_s15 = int_to_ptr.vmem [resolvable:$true] %s53_s15 }
  0x24   :  { %p1339_p3 = scmp.lt.u32.totalorder %s1335_s18, %s1617_s6 }
  0x26   :  { %p1341_p4 = pnand %p1339_p3, %p1336_p2 }
  0x28   :  { %1344 = shalt.err (!%p1341_p4)
}
  0x29   :  { %s1345_s25 = scalar_lea.vmem %s54_s15, 2048  ;;  %p1350_p6 = scmp.lt.s32.totalorder %s54_s15, %s54_s15 }
  0x2a   :  { %p1346_p5 = scmp.ne.s32.totalorder %s54_s15, %s1345_s25  ;;  %p1351_p7 = scmp.lt.s32.totalorder %s1345_s25, %s1345_s25 }
  0x2c   :  { %p1352_p8 = por %p1351_p7, %p1350_p6 }
  0x2e   :  { %p1353_p9 = pnand %p1352_p8, %p1346_p5 }
  0x30   :  { %1356 = shalt.err (!%p1353_p9)
}
  0x31   :  { %59 = dma.hbm_to_vmem [thread:$0]  %s1617_s6, 2048, %s54_s15, [#allocation5], %s1363_s21, %s1363_s21, %s1364_s22  }
  0x32   :  { %1357 = dma.done.wait [#allocation3], 2048  }
  0x33   :  { %1358 = vsyncadd [#allocation3], 4294965248 }
  0x34   :  { %1359 = dma.done.wait [#allocation5], 4096  }
  0x35   :  { %1360 = vsyncadd [#allocation5], 4294963200  ;;  %vm103_vm0 = vcmask 1045504   ;;  %v1366_v0 = vmov 0   ;;  %vm104_vm1 = vcmask 1046528   ;;  %v1367_v1 = vmov 65535  }
  0x36   :  { %145 = vmatprep.mubr.bf16.mxu0 %v1366_v0  ;;  %v105_v2 = vsel %vm103_vm0, 4294967295, %v1367_v1  ;;  %vm402_vm2 = vcmask 1041408   ;;  %v1214_v4 = vld [vmem:[%s1613_s2 + $0x4] ss:$8 sps:$4 sm:$0x7f]   ;;  %vm99_vm3 = vcmask 105472   ;;  %v83_v15 = vlaneseq }
  0x37   :  { %v106_v3 = vsel %vm104_vm1, %v105_v2, 0  ;;  %v1216_v5 = vld [vmem:[%s1613_s2] ss:$8 sps:$4 sm:$0x7f]   ;;  %vm398_vm4 = vcmask 31744   ;;  %v1221_v57 = vld [vmem:[#allocation2 + $0x50] sm:$0xff]  }
  0x38   :  { %v77_v6 = vld [vmem:[%s1611_s0] sm:$0xff]  ;;  %v111_v7 = vand.u32 %v1214_v4, %v106_v3  ;;  %v108_v9 = vand.u32 %v1216_v5, %v106_v3  ;;  %v1487_v16 = vshrl.u32 %v83_v15, 7  ;;  %v1500_v19 = vld [vmem:[%s1619_s8 + $0x8] sm:$0xff]  ;;  %v1223_v59 = vld [vmem:[#allocation2 + $0x10] sm:$0xff]   ;;  %vm1369_vm5 = vmmov 0  }
  0x39   :  { %v1031_v8 = vld.sshfl [vmem:[%s1614_s3] sm:$0x33 pattern:$0x76325410]  ;;  %v78_v12 = vpack.c.bf16 %v77_v6, %v77_v6  ;;  %v1219_v55 = vld [vmem:[#allocation2 + $0x48] sm:$0xff]   ;;  %v1225_v61 = vld [vmem:[#allocation2 + $0x58] sm:$0xff]  }
  0x3a   :  { %v397_v10 = vcombine.high %v1031_v8, %v1031_v8  ;;  %v404_v11 = vsel %vm402_vm2, %v1031_v8, 0  ;;  %113 = vmatprep.subr.bf16.mxu0 %v111_v7  ;;  %v79_v13 = vld [vmem:[%s1612_s1] sm:$0xff]  ;;  %v1490_v17 = vsub.s32 0, %v1487_v16  ;;  %v1507_v25 = vsub.s32 1, %v1487_v16  ;;  %v1220_v56 = vld [vmem:[#allocation2 + $0x8] sm:$0xff]   ;;  %v1227_v63 = vld [vmem:[#allocation2 + $0x18] sm:$0xff]  }
  0x3b   :  { %114 = vmatpush1.bf16.msra.mxu0 %v108_v9  ;;  %v80_v14 = vpack.c.bf16 %v79_v13, %v79_v13  ;;  %v1495_v18 = vld [vmem:[%s1619_s8] sm:$0xff]  ;;  %v1226_v62 = vld [vmem:[#allocation4 + $0x48] sm:$0xff]   ;;  %v1230_v2 = vld [vmem:[#allocation4 + $0x50] sm:$0xff]   ;;  %vm1004_vm6 = vcmask 7168  }
  0x3c   :  { %1032 = vmatprep.subr.msk.bf16.mxu0 %vm402_vm2, %v397_v10  ;;  %v86_v20 = vrot.slane %v1495_v18, %v1490_v17  ;;  %v90_v21 = vrot.slane %v1500_v19, %v1490_v17  ;;  %v384_v30 = vrot.slane %v1495_v18, %v1507_v25  ;;  %v388_v31 = vrot.slane %v1500_v19, %v1507_v25  ;;  %v1217_v53 = vld [vmem:[#allocation2 + $0x40] sm:$0xff]   ;;  %v1232_v4 = vld [vmem:[#allocation4 + $0x10] sm:$0xff]   ;;  %v1233_v5 = vld [vmem:[#allocation2 + $0x68] sm:$0xff]  }
  0x3d   :  { %v1218_v54 = vld [vmem:[#allocation2] sm:$0xff]   ;;  %1074 = vmatprep.subr.bf16.mxu1 %v1217_v53  ;;  %v1234_v6 = vld [vmem:[#allocation4 + $0x58] sm:$0xff]   ;;  %v1235_v7 = vld [vmem:[#allocation2 + $0x28] sm:$0xff]  }
  0x3e   :  { %1014 = vmatmul.mubr.msk.bf16.vlgmr.msra.gmra.mrb[0].mxu0 %vm99_vm3, %v78_v12  ;;  %1075 = vmatpush3.bf16.msra.mxu1 %v1218_v54  ;;  %v1222_v58 = vld [vmem:[#allocation4 + $0x40] sm:$0xff]   ;;  %v1236_v8 = vld [vmem:[#allocation4 + $0x18] sm:$0xff]   ;;  %v1237_v9 = vld [vmem:[#allocation2 + $0x70] sm:$0xff]  }
  0x3f   :  { %410 = vmatpush1.bf16.msra.mxu0 %v404_v11  ;;  %441 = vmatprep.mubr.bf16.mxu0 %v1366_v0  ;;  %v1224_v60 = vld [vmem:[#allocation4] sm:$0xff]   ;;  %v1228_v0 = vld [vmem:[#allocation4 + $0x8] sm:$0xff]   ;;  %v1239_v11 = vld [vmem:[#allocation2 + $0x30] sm:$0xff]  }
  0x40   :  { %1076 = vmatprep.subr.bf16.mxu1 %v1219_v55  ;;  %1096 = vmatprep.subr.bf16.mxu0 %v1222_v58  ;;  %v1229_v1 = vld [vmem:[#allocation2 + $0x60] sm:$0xff]   ;;  %v1241_v13 = vld [vmem:[#allocation2 + $0x78] sm:$0xff]  }
  0x41   :  { %v1231_v3 = vld [vmem:[#allocation2 + $0x20] sm:$0xff]   ;;  %v1243_v15 = vld [vmem:[#allocation2 + $0x38] sm:$0xff]  }
  0x42   :  { %1077 = vmatpush3.bf16.msra.mxu1 %v1220_v56  ;;  %v1238_v10 = vld [vmem:[#allocation4 + $0x60] sm:$0xff]  }
  0x43   :  { %1078 = vmatprep.subr.bf16.mxu1 %v1221_v57  ;;  %v1240_v12 = vld [vmem:[#allocation4 + $0x20] sm:$0xff]  }
  0x46   :  { %1033 = vmatmul.mubr.msk.bf16.vlgmr.msra.gmra.mrb[4].mxu0 %vm398_vm4, %v80_v14  ;;  %1079 = vmatpush3.bf16.msra.mxu1 %v1223_v59  ;;  %v1242_v14 = vld [vmem:[#allocation4 + $0x68] sm:$0xff]  }
  0x47   :  { %1097 = vmatpush3.bf16.msra.mxu0 %v1224_v60  ;;  %1080 = vmatprep.subr.bf16.mxu1 %v1225_v61 }
  0x48   :  { %1098 = vmatprep.subr.bf16.mxu0 %v1226_v62 }
  0x4a   :  { %1081 = vmatpush3.bf16.msra.mxu1 %v1227_v63 }
  0x4b   :  { %1099 = vmatpush3.bf16.msra.mxu0 %v1228_v0  ;;  %1082 = vmatprep.subr.bf16.mxu1 %v1229_v1 }
  0x4c   :  { %1100 = vmatprep.subr.bf16.mxu0 %v1230_v2 }
  0x4e   :  { %1083 = vmatpush3.bf16.msra.mxu1 %v1231_v3 }
  0x4f   :  { %1101 = vmatpush3.bf16.msra.mxu0 %v1232_v4  ;;  %1084 = vmatprep.subr.bf16.mxu1 %v1233_v5 }
  0x50   :  { %1102 = vmatprep.subr.bf16.mxu0 %v1234_v6 }
  0x52   :  { %1085 = vmatpush3.bf16.msra.mxu1 %v1235_v7 }
  0x53   :  { %1103 = vmatpush3.bf16.msra.mxu0 %v1236_v8  ;;  %1086 = vmatprep.subr.bf16.mxu1 %v1237_v9 }
  0x54   :  { %1104 = vmatprep.subr.bf16.mxu0 %v1238_v10 }
  0x56   :  { %1087 = vmatpush3.bf16.msra.mxu1 %v1239_v11 }
  0x57   :  { %1105 = vmatpush3.bf16.msra.mxu0 %v1240_v12  ;;  %1088 = vmatprep.subr.bf16.mxu1 %v1241_v13 }
  0x58   :  { %1106 = vmatprep.subr.bf16.mxu0 %v1242_v14 }
  0x5a   :  { %1089 = vmatpush3.bf16.msra.mxu1 %v1243_v15 }
 0x111   :  { %v147_v22 = vpop.f32.mrb[0].mxu0 }
 0x112   :  { %v148_v23 = vadd.f32 %v147_v22, %v86_v20  ;;  %v149_v24 = vpop.f32.mrb[1].mxu0  ;;  %v1244_v20 = vld [vmem:[#allocation4 + $0x28] sm:$0xff]   ;;  %v1246_v22 = vld [vmem:[#allocation4 + $0x30] sm:$0xff]  }
 0x113   :  { %v150_v26 = vadd.f32 %v149_v24, %v90_v21  ;;  %v151_v27 = vpop.f32.mrb[2].mxu0  ;;  %1107 = vmatpush3.bf16.msra.mxu0 %v1244_v20  ;;  %v1245_v21 = vld [vmem:[#allocation4 + $0x70] sm:$0xff]   ;;  %v1248_v24 = vld [vmem:[#allocation4 + $0x38] sm:$0xff]  }
 0x114   :  { %v152_v28 = vpop.f32.mrb[3].mxu0  ;;  %1108 = vmatprep.subr.bf16.mxu0 %v1245_v21  ;;  %v1249_v21 = vld [vmem:[#allocation6] sm:$0xff]  }
 0x115   :  { %v154_v29 = vadd.f32 %v150_v26, %v148_v23 }
 0x117   :  { %155 = vadd.xlane.f32.xlu0 %v154_v29  ;;  %1109 = vmatpush3.bf16.msra.mxu0 %v1246_v22 }
 0x119   :  { %v443_v32 = vpop.f32.mrb[4].mxu0 }
 0x11a   :  { %v444_v33 = vadd.f32 %v443_v32, %v384_v30  ;;  %v445_v34 = vpop.f32.mrb[5].mxu0  ;;  %v173_v32 = vsub.s32 2, %v1487_v16 }
 0x11b   :  { %v446_v35 = vadd.f32 %v445_v34, %v388_v31  ;;  %v447_v36 = vpop.f32.mrb[6].mxu0  ;;  %v183_v34 = vsub.s32 3, %v1487_v16 }
 0x11c   :  { %v448_v37 = vpop.f32.mrb[7].mxu0  ;;  %v174_v36 = vrot.slane %v1495_v18, %v173_v32 }
 0x11d   :  { %v450_v38 = vadd.f32 %v446_v35, %v444_v33 }
 0x11f   :  { %451 = vadd.xlane.f32.xlu0 %v450_v38 }
 0x1a4   :  { %v156_v39 = vpop.xlane.xlu0 %155 }
 0x1a5   :  { %v158_v40 = vmul.f32 0.00390625, %v156_v39  ;;  %v188_v39 = vrot.slane %v1500_v19, %v183_v34 }
 0x1a7   :  { %v1513_v41 = vsub.f32 %v148_v23, %v158_v40  ;;  %v1515_v42 = vsub.f32 %v150_v26, %v158_v40  ;;  %v1247_v23 = vld [vmem:[#allocation4 + $0x78] sm:$0xff]   ;;  %v1368_v26 = vmov 0.0  }
 0x1a8   :  { %1110 = vmatprep.subr.bf16.mxu0 %v1247_v23  ;;  %1145 = vmatprep.subr.bf16.mxu1 %v1368_v26  ;;  %v1250_v23 = vld [vmem:[#allocation6 + $0x8] sm:$0xff]  }
 0x1a9   :  { %v161_v43 = vmul.f32 %v1513_v41, %v1513_v41  ;;  %v162_v44 = vmul.f32 %v1515_v42, %v1515_v42  ;;  %1111 = vmatpush3.bf16.msra.mxu0 %v1248_v24  ;;  %v1251_v24 = vld [vmem:[#allocation6 + $0x40] sm:$0xff]  }
 0x1aa   :  { %1165 = vmatprep.subr.bf16.mxu0 %v1368_v26 }
 0x1ab   :  { %v163_v45 = vadd.f32 %v162_v44, %v161_v43  ;;  %v184_v43 = vrot.slane %v1495_v18, %v183_v34  ;;  %v468_v44 = vsub.s32 4, %v1487_v16  ;;  %v1259_v34 = vld [vmem:[#allocation6 + $0x60] sm:$0xff]  }
 0x1ac   :  { %v452_v46 = vpop.xlane.xlu0 %451 }
 0x1ad   :  { %v453_v47 = vmul.f32 0.00390625, %v452_v46  ;;  %164 = vadd.xlane.f32.xlu1 %v163_v45 }
 0x1af   :  { %v1521_v48 = vsub.f32 %v444_v33, %v453_v47  ;;  %v1523_v49 = vsub.f32 %v446_v35, %v453_v47  ;;  %v178_v35 = vrot.slane %v1500_v19, %v173_v32  ;;  %v478_v47 = vsub.s32 5, %v1487_v16  ;;  %v1257_v32 = vld [vmem:[#allocation6 + $0x58] sm:$0xff]  }
 0x1b1   :  { %v456_v50 = vmul.f32 %v1521_v48, %v1521_v48  ;;  %v457_v51 = vmul.f32 %v1523_v49, %v1523_v49  ;;  %v483_v56 = vrot.slane %v1500_v19, %v478_v47  ;;  %v479_v58 = vrot.slane %v1495_v18, %v478_v47 }
 0x1b3   :  { %v458_v52 = vadd.f32 %v457_v51, %v456_v50 }
 0x1b5   :  { %459 = vadd.xlane.f32.xlu1 %v458_v52  ;;  %v469_v52 = vrot.slane %v1495_v18, %v468_v44 }
 0x23a   :  { %v165_v27 = vpop.xlane.xlu1 %164 }
 0x23b   :  { %v166_v28 = vmul.f32 0.00390625, %v165_v27  ;;  %v1252_v27 = vld [vmem:[#allocation6 + $0x10] sm:$0xff]  }
 0x23d   :  { %v167_v29 = vadd.f32 1e-05, %v166_v28  ;;  %v1253_v28 = vld [vmem:[#allocation6 + $0x48] sm:$0xff]  }
 0x23f   :  { %1273 = vrsqrt.f32 %v167_v29  ;;  %v1254_v29 = vld [vmem:[#allocation6 + $0x18] sm:$0xff]  }
 0x242   :  { %v460_v30 = vpop.xlane.xlu1 %459 }
 0x243   :  { %v461_v31 = vmul.f32 0.00390625, %v460_v30  ;;  %v1255_v30 = vld [vmem:[#allocation6 + $0x50] sm:$0xff]  }
 0x245   :  { %v462_v33 = vadd.f32 1e-05, %v461_v31  ;;  %v1256_v31 = vld [vmem:[#allocation6 + $0x20] sm:$0xff]  }
 0x247   :  { %1275 = vrsqrt.f32 %v462_v33  ;;  %v1258_v33 = vld [vmem:[#allocation6 + $0x28] sm:$0xff]  }
 0x249   :  { %v1274_v37 = vpop.eup %1273 }
 0x24a   :  { %v170_v38 = vmul.f32 %v1274_v37, %v1515_v42  ;;  %v169_v40 = vmul.f32 %v1274_v37, %v1513_v41  ;;  %v473_v42 = vrot.slane %v1500_v19, %v468_v44  ;;  %v1262_v37 = vld [vmem:[#allocation6 + $0x38] sm:$0xff]  }
 0x24c   :  { %v180_v45 = vmul.f32 %v178_v35, %v170_v38  ;;  %v179_v46 = vmul.f32 %v174_v36, %v169_v40  ;;  %v1260_v35 = vld [vmem:[#allocation6 + $0x30] sm:$0xff]   ;;  %v1261_v36 = vld [vmem:[#allocation6 + $0x68] sm:$0xff]   ;;  %v237_v40 = vsub.s32 6, %v1487_v16 }
 0x24d   :  { %v1263_v38 = vld [vmem:[#allocation6 + $0x70] sm:$0xff]  }
 0x24e   :  { %v190_v50 = vadd.f32 %v188_v39, %v180_v45  ;;  %v189_v51 = vadd.f32 %v184_v43, %v179_v46  ;;  %v1264_v39 = vld [vmem:[#allocation6 + $0x78] sm:$0xff]   ;;  %v238_v44 = vrot.slane %v1495_v18, %v237_v40 }
 0x250   :  { %v194_v53 = vmul.f32 0.70710677, %v190_v50  ;;  %v193_v54 = vmul.f32 0.70710677, %v189_v51  ;;  %v192_v3 = vmul.f32 0.5, %v190_v50  ;;  %v191_v4 = vmul.f32 0.5, %v189_v51 }
 0x251   :  { %v1276_v55 = vpop.eup %1275 }
 0x252   :  { %v464_v41 = vmul.f32 %v1276_v55, %v1521_v48  ;;  %v465_v57 = vmul.f32 %v1276_v55, %v1523_v49  ;;  %1277 = verf.f32 %v194_v53 }
 0x253   :  { %1279 = verf.f32 %v193_v54 }
 0x254   :  { %v474_v59 = vmul.f32 %v469_v52, %v464_v41  ;;  %v475_v60 = vmul.f32 %v473_v42, %v465_v57  ;;  %v532_v52 = vsub.s32 7, %v1487_v16 }
 0x256   :  { %v485_v61 = vadd.f32 %v483_v56, %v475_v60  ;;  %v484_v62 = vadd.f32 %v479_v58, %v474_v59  ;;  %v533_v42 = vrot.slane %v1495_v18, %v532_v52  ;;  %v1265_v18 = vld [vmem:[%s1618_s7] sm:$0xff]  }
 0x258   :  { %v489_v63 = vmul.f32 0.70710677, %v485_v61  ;;  %v488_v0 = vmul.f32 0.70710677, %v484_v62  ;;  %v487_v10 = vmul.f32 0.5, %v485_v61  ;;  %v486_v12 = vmul.f32 0.5, %v484_v62 }
 0x25a   :  { %1281 = verf.f32 %v489_v63 }
 0x25b   :  { %1283 = verf.f32 %v488_v0 }
 0x25c   :  { %v1278_v1 = vpop.eup %1277 }
 0x25d   :  { %v1280_v2 = vpop.eup %1279  ;;  %v198_v19 = vadd.f32 1.0, %v1278_v1 }
 0x25e   :  { %v197_v48 = vadd.f32 1.0, %v1280_v2 }
 0x25f   :  { %v200_v5 = vmul.f32 %v198_v19, %v192_v3 }
 0x260   :  { %v199_v49 = vmul.f32 %v197_v48, %v191_v4  ;;  %v1266_v4 = vld [vmem:[%s1618_s7 + $0x8] sm:$0xff]   ;;  %v1267_v48 = vld [vmem:[%s1618_s7 + $0x10] sm:$0xff]  }
 0x261   :  { %v202_v6 = vpack.c.bf16 %v200_v5, %v200_v5  ;;  %v1268_v5 = vld [vmem:[%s1618_s7 + $0x18] sm:$0xff]  }
 0x262   :  { %v201_v7 = vpack.c.bf16 %v199_v49, %v199_v49  ;;  %v1269_v49 = vld [vmem:[%s1618_s7 + $0x20] sm:$0xff]  }
 0x263   :  { %367 = vmatprep.mubr.bf16.mxu1 %v202_v6  ;;  %v1270_v6 = vld [vmem:[%s1618_s7 + $0x28] sm:$0xff]  }
 0x264   :  { %v1282_v8 = vpop.eup %1281  ;;  %368 = vmatmul.mubr.bf16.vlgmr.msra.gmra.mrb[0].mxu1 %v201_v7  ;;  %v1271_v7 = vld [vmem:[%s1618_s7 + $0x30] sm:$0xff]  }
 0x265   :  { %v1284_v9 = vpop.eup %1283  ;;  %v493_v11 = vadd.f32 1.0, %v1282_v8  ;;  %1146 = vmatpush3.bf16.msra.mxu1 %v1251_v24  ;;  %1161 = vmatprep.mubr.msk.bf16.mxu1 %vm1369_vm5, %v1368_v26  ;;  %v1272_v8 = vld [vmem:[%s1618_s7 + $0x38] sm:$0xff]  }
 0x266   :  { %v492_v13 = vadd.f32 1.0, %v1284_v9  ;;  %1147 = vmatprep.subr.bf16.mxu1 %v1368_v26 }
 0x267   :  { %v495_v14 = vmul.f32 %v493_v11, %v487_v10 }
 0x268   :  { %v494_v15 = vmul.f32 %v492_v13, %v486_v12  ;;  %v76_v13 = vld [vmem:[%s1619_s8 + $0x10] sm:$0xff] }
 0x269   :  { %v497_v20 = vpack.c.bf16 %v495_v14, %v495_v14  ;;  %1148 = vmatpush3.bf16.msra.mxu1 %v1253_v28  ;;  %v888_v14 = vrot.slane %v76_v13, %v1490_v17 }
 0x26a   :  { %v496_v22 = vpack.c.bf16 %v494_v15, %v494_v15  ;;  %1149 = vmatprep.subr.bf16.mxu1 %v1368_v26 }
 0x26b   :  { %662 = vmatprep.mubr.bf16.mxu0 %v497_v20 }
 0x26c   :  { %663 = vmatmul.mubr.bf16.vlgmr.msra.gmra.mrb[8].mxu0 %v496_v22 }
 0x26d   :  { %1166 = vmatpush3.bf16.msra.mxu0 %v1249_v21  ;;  %1150 = vmatpush3.bf16.msra.mxu1 %v1255_v30 }
 0x26e   :  { %1167 = vmatprep.subr.bf16.mxu0 %v1368_v26  ;;  %1151 = vmatprep.subr.bf16.mxu1 %v1368_v26 }
 0x26f   :  { %1181 = vmatprep.mubr.msk.bf16.mxu0 %vm1369_vm5, %v1368_v26 }
 0x271   :  { %1168 = vmatpush3.bf16.msra.mxu0 %v1250_v23  ;;  %1152 = vmatpush3.bf16.msra.mxu1 %v1257_v32  ;;  %v915_v32 = vrot.slane %v76_v13, %v1507_v25 }
 0x272   :  { %1169 = vmatprep.subr.bf16.mxu0 %v1368_v26  ;;  %1153 = vmatprep.subr.bf16.mxu1 %v1368_v26 }
 0x275   :  { %1170 = vmatpush3.bf16.msra.mxu0 %v1252_v27  ;;  %1154 = vmatpush3.bf16.msra.mxu1 %v1259_v34 }
 0x276   :  { %1171 = vmatprep.subr.bf16.mxu0 %v1368_v26  ;;  %1155 = vmatprep.subr.bf16.mxu1 %v1368_v26 }
 0x279   :  { %1172 = vmatpush3.bf16.msra.mxu0 %v1254_v29  ;;  %1156 = vmatpush3.bf16.msra.mxu1 %v1261_v36 }
 0x27a   :  { %1173 = vmatprep.subr.bf16.mxu0 %v1368_v26  ;;  %1157 = vmatprep.subr.bf16.mxu1 %v1368_v26 }
 0x27d   :  { %1174 = vmatpush3.bf16.msra.mxu0 %v1256_v31  ;;  %1158 = vmatpush3.bf16.msra.mxu1 %v1263_v38 }
 0x27e   :  { %1175 = vmatprep.subr.bf16.mxu0 %v1368_v26  ;;  %1159 = vmatprep.subr.bf16.mxu1 %v1368_v26 }
 0x281   :  { %1176 = vmatpush3.bf16.msra.mxu0 %v1258_v33  ;;  %1160 = vmatpush3.bf16.msra.mxu1 %v1264_v39 }
 0x282   :  { %1177 = vmatprep.subr.bf16.mxu0 %v1368_v26  ;;  %1185 = vmatprep.subr.bf16.mxu1 %v1368_v26 }
 0x285   :  { %1178 = vmatpush3.bf16.msra.mxu0 %v1260_v35 }
 0x286   :  { %1179 = vmatprep.subr.bf16.mxu0 %v1368_v26 }
 0x289   :  { %1180 = vmatpush3.bf16.msra.mxu0 %v1262_v37 }
 0x337   :  { %v1090_v43 = vpop.f32.mrb[0].mxu1 }
 0x338   :  { %v1091_v45 = vpop.f32.mrb[1].mxu1 }
 0x339   :  { %v1092_v46 = vadd.f32 %v1091_v45, %v1090_v43  ;;  %v1093_v47 = vpop.f32.mrb[2].mxu1 }
 0x33a   :  { %v1094_v50 = vpop.f32.mrb[3].mxu1 }
 0x33b   :  { %v370_v51 = vadd.f32 %v1092_v46, %v238_v44 }
 0x33d   :  { %v376_v53 = vmul.f32 0.70710677, %v370_v51  ;;  %v375_v61 = vmul.f32 0.5, %v370_v51 }
 0x33f   :  { %1285 = verf.f32 %v376_v53  ;;  %v1112_v54 = vpop.f32.mrb[8].mxu0 }
 0x340   :  { %v1113_v55 = vpop.f32.mrb[9].mxu0 }
 0x341   :  { %v1114_v56 = vadd.f32 %v1113_v55, %v1112_v54  ;;  %v1115_v41 = vpop.f32.mrb[10].mxu0 }
 0x342   :  { %v1116_v57 = vpop.f32.mrb[11].mxu0 }
 0x343   :  { %v665_v58 = vadd.f32 %v1114_v56, %v533_v42 }
 0x345   :  { %v671_v59 = vmul.f32 0.70710677, %v665_v58  ;;  %v670_v16 = vmul.f32 0.5, %v665_v58 }
 0x347   :  { %1287 = verf.f32 %v671_v59 }
 0x349   :  { %v1286_v60 = vpop.eup %1285 }
 0x34a   :  { %v378_v62 = vadd.f32 1.0, %v1286_v60 }
 0x34c   :  { %v379_v63 = vmul.f32 %v378_v62, %v375_v61 }
 0x34e   :  { %v675_v0 = vpack.c.bf16 %v379_v63, %v379_v63 }
 0x350   :  { %1182 = vmatmul.mubr.bf16.vlgmr.msra.gmra.mrb[12].mxu0 %v675_v0 }
 0x351   :  { %v1288_v1 = vpop.eup %1287 }
 0x352   :  { %v673_v2 = vadd.f32 1.0, %v1288_v1 }
 0x354   :  { %v674_v3 = vmul.f32 %v673_v2, %v670_v16 }
 0x356   :  { %v692_v19 = vpack.c.bf16 %v674_v3, %v674_v3 }
 0x358   :  { %1162 = vmatmul.mubr.bf16.vlgmr.msra.gmra.mrb[4].mxu1 %v692_v19 }
 0x359   :  { %1201 = vmatprep.mubr.msk.bf16.mxu1 %vm1369_vm5, %v1368_v26  ;;  %1186 = vmatpush3.bf16.msra.mxu1 %v1265_v18 }
 0x35a   :  { %1187 = vmatprep.subr.bf16.mxu1 %v1368_v26 }
 0x35d   :  { %1188 = vmatpush3.bf16.msra.mxu1 %v1266_v4 }
 0x35e   :  { %1189 = vmatprep.subr.bf16.mxu1 %v1368_v26 }
 0x361   :  { %1190 = vmatpush3.bf16.msra.mxu1 %v1267_v48 }
 0x362   :  { %1191 = vmatprep.subr.bf16.mxu1 %v1368_v26 }
 0x365   :  { %1192 = vmatpush3.bf16.msra.mxu1 %v1268_v5 }
 0x366   :  { %1193 = vmatprep.subr.bf16.mxu1 %v1368_v26 }
 0x369   :  { %1194 = vmatpush3.bf16.msra.mxu1 %v1269_v49 }
 0x36a   :  { %1195 = vmatprep.subr.bf16.mxu1 %v1368_v26 }
 0x36d   :  { %1196 = vmatpush3.bf16.msra.mxu1 %v1270_v6 }
 0x36e   :  { %1197 = vmatprep.subr.bf16.mxu1 %v1368_v26 }
 0x371   :  { %1198 = vmatpush3.bf16.msra.mxu1 %v1271_v7 }
 0x372   :  { %1199 = vmatprep.subr.bf16.mxu1 %v1368_v26 }
 0x375   :  { %1200 = vmatpush3.bf16.msra.mxu1 %v1272_v8 }
 0x423   :  { %v879_v9 = vpop.f32.mrb[12].mxu0 }
 0x424   :  { %v1183_v10 = vpop.f32.mrb[13].mxu0 }
 0x425   :  { %v882_v11 = vpop.f32.mrb[14].mxu0 }
 0x426   :  { %v1184_v12 = vpop.f32.mrb[15].mxu0 }
 0x42b   :  { %v791_v15 = vpop.f32.mrb[4].mxu1 }
 0x42c   :  { %v880_v20 = vadd.f32 %v879_v9, %v791_v15  ;;  %v1163_v21 = vpop.f32.mrb[5].mxu1 }
 0x42d   :  { %v794_v22 = vpop.f32.mrb[6].mxu1 }
 0x42e   :  { %v889_v26 = vadd.f32 %v888_v14, %v880_v20  ;;  %v1164_v23 = vpop.f32.mrb[7].mxu1 }
 0x430   :  { %v891_v24 = vmul.f32 0.70710677, %v889_v26  ;;  %v890_v28 = vmul.f32 0.5, %v889_v26 }
 0x432   :  { %1289 = verf.f32 %v891_v24 }
 0x43c   :  { %v1290_v27 = vpop.eup %1289 }
 0x43d   :  { %v893_v29 = vadd.f32 1.0, %v1290_v27 }
 0x43f   :  { %v894_v30 = vmul.f32 %v893_v29, %v890_v28 }
 0x441   :  { %v895_v31 = vpack.c.bf16 %v894_v30, %v894_v30 }
 0x443   :  { %1202 = vmatmul.mubr.bf16.vlgmr.msra.gmra.mrb[8].mxu1 %v895_v31 }
 0x516   :  { %v998_v33 = vpop.f32.mrb[8].mxu1 }
 0x517   :  { %v999_v34 = vadd.f32 %v998_v33, %v915_v32  ;;  %v1203_v17 = vpop.f32.mrb[9].mxu1 }
 0x518   :  { %v1001_v35 = vpop.f32.mrb[10].mxu1 }
 0x519   :  { %1005 = vst.msk [vmem:[%s1620_s9] sm:$0xff] %vm1004_vm6, %v999_v34  ;;  %v1204_v36 = vpop.f32.mrb[11].mxu1 }
 0x51a   :  { %1010 = vsyncpa [#allocation3], 1 }
 0x51b   :  { %1011 = vsyncpa [#allocation5], 1 }

</bundles_post_ra>
